<compile_context>
chip_gen: v7x
topology: tpu7x:2x2x1
jax: 0.10.0
libtpu: 0.0.40
codegen_flags: <defaults>
</compile_context>

<pallas_src>
import jax
import jax.numpy as jnp
from jax.experimental import pallas as pl
from jax.experimental.pallas import tpu as pltpu


def encoder_kernel(self_ref, adj_ref, feats_ref, w_selfT_ref, w_neighT_ref,
                   out_ref, acc_ref):
    k = pl.program_id(1)

    # Init the neighbor-mean accumulator at the start of the reduction axis.
    @pl.when(k == 0)
    def _():
        acc_ref[...] = jnp.zeros_like(acc_ref)

    # Partial mean aggregation: [tb, tn] @ [tn, F] -> [tb, F], bf16 MXU, f32 acc.
    acc_ref[...] += jnp.dot(adj_ref[...], feats_ref[...],
                            preferred_element_type=jnp.float32)

    # Finalize: encoder matmul with the concat folded into two accumulated dots,
    # both in plain A @ B orientation (weights pre-transposed to [F, E]).
    @pl.when(k == pl.num_programs(1) - 1)
    def _():
        emb = jnp.dot(self_ref[...], w_selfT_ref[...],
                      preferred_element_type=jnp.float32)
        emb = emb + jnp.dot(acc_ref[...].astype(jnp.bfloat16), w_neighT_ref[...],
                            preferred_element_type=jnp.float32)
        out_ref[...] = jnp.maximum(emb, 0.0)       # relu, [tb, E] lane-dense tile


def encoder_forward(self_feats, adj_norm, feats, w_enc, *, tb=128, tn=512):
    """relu(W_enc @ concat([self_feats, adj_norm @ feats], 1).T) -> [E, B]."""
    B, F = self_feats.shape
    N = feats.shape[0]
    E = w_enc.shape[0]
    assert B % tb == 0 and N % tn == 0, "pad B / N to the tile sizes"

    # bf16 streaming inputs; the concat becomes two accumulated matmuls with
    # pre-transposed weights so the finalize dots are un-transposed A @ B.
    self_bf = self_feats.astype(jnp.bfloat16)
    adj_bf = adj_norm.astype(jnp.bfloat16)
    feats_bf = feats.astype(jnp.bfloat16)
    w_selfT = jnp.transpose(w_enc[:, :F]).astype(jnp.bfloat16)    # [F, E]
    w_neighT = jnp.transpose(w_enc[:, F:]).astype(jnp.bfloat16)   # [F, E]

    grid = (B // tb, N // tn)

    out_bE = pl.pallas_call(
        encoder_kernel,
        out_shape=jax.ShapeDtypeStruct((B, E), jnp.float32),
        grid_spec=pltpu.PrefetchScalarGridSpec(
            num_scalar_prefetch=0,
            grid=grid,
            in_specs=[
                pl.BlockSpec((tb, F), lambda i, k: (i, 0)),    # self feats (bf16)
                pl.BlockSpec((tb, tn), lambda i, k: (i, k)),   # neighbor mask (bf16)
                pl.BlockSpec((tn, F), lambda i, k: (k, 0)),    # feature table (bf16)
                pl.BlockSpec((F, E), lambda i, k: (0, 0)),     # W_self^T (resident)
                pl.BlockSpec((F, E), lambda i, k: (0, 0)),     # W_neigh^T (resident)
            ],
            out_specs=pl.BlockSpec((tb, E), lambda i, k: (i, 0)),
            scratch_shapes=[pltpu.VMEM((tb, F), jnp.float32)],
        ),
        compiler_params=pltpu.CompilerParams(
            dimension_semantics=("parallel", "arbitrary"),
            vmem_limit_bytes=48 * 1024 * 1024),
    )(self_bf, adj_bf, feats_bf, w_selfT, w_neighT)

    # Module semantics return [embed_dim, B]; transpose the small result outside.
    return out_bE.T


def xavier_uniform(key, shape):
    fan_out, fan_in = shape
    bound = jnp.sqrt(6.0 / (fan_in + fan_out))
    return jax.random.uniform(key, shape, jnp.float32, -bound, bound)


if __name__ == "__main__":
    # Small (but vreg/MXU-aligned) synthetic GraphSAGE problem.
    N_total = 512     # nodes in the feature table
    F_dim = 128       # raw feature dim
    B = 256           # batch of query nodes
    E_dim = 128       # encoder embed_dim
    S = 10            # avg sampled neighbors per node

    key = jax.random.PRNGKey(0)
    k_feat, k_adj, k_enc, k_nodes = jax.random.split(key, 4)

    # Node feature table (the nn.Embedding weights in the reference).
    feats = jax.random.normal(k_feat, (N_total, F_dim), jnp.float32)

    # Batch of query nodes; self features = embedding lookup of those nodes.
    nodes = jax.random.permutation(k_nodes, N_total)[:B]
    self_feats = feats[nodes]

    # Deterministic sampled-neighbor mask (what MeanAggregator builds),
    # row-normalized so adj_norm @ feats is the neighbor mean.
    adj = (jax.random.uniform(k_adj, (B, N_total)) < (S / N_total)).astype(jnp.float32)
    adj = adj.at[:, 0].set(1.0)   # guarantee >=1 neighbor per node (no 0-division)
    adj_norm = adj / jnp.sum(adj, axis=1, keepdims=True)

    # Encoder weight [embed_dim, 2*feat_dim], xavier_uniform like the reference.
    w_enc = xavier_uniform(k_enc, (E_dim, 2 * F_dim))

    out = encoder_forward(self_feats, adj_norm, feats, w_enc)
    out = jax.block_until_ready(out)
    assert out.shape == (E_dim, B)

    # 1) Numerics-mirrored reference: bf16-rounded inputs, f32 accumulation
    #    (exactly what the kernel computes) -- tight tolerance.
    f32 = jnp.float32
    adj_q = adj_norm.astype(jnp.bfloat16).astype(f32)
    feats_q = feats.astype(jnp.bfloat16).astype(f32)
    self_q = self_feats.astype(jnp.bfloat16).astype(f32)
    w_selfT_q = jnp.transpose(w_enc[:, :F_dim]).astype(jnp.bfloat16).astype(f32)
    w_neighT_q = jnp.transpose(w_enc[:, F_dim:]).astype(jnp.bfloat16).astype(f32)
    neigh_q = (adj_q @ feats_q).astype(jnp.bfloat16).astype(f32)
    emb_mirror = jnp.maximum(self_q @ w_selfT_q + neigh_q @ w_neighT_q, 0.0).T
    assert jnp.allclose(out, emb_mirror, atol=1e-2, rtol=1e-2)

    # 2) Full-f32 PyTorch-semantics reference -- loose tolerance for bf16 inputs.
    neigh_ref = adj_norm @ feats
    combined_ref = jnp.concatenate([self_feats, neigh_ref], axis=1)
    emb_ref = jnp.maximum(w_enc @ combined_ref.T, 0.0)   # [E, B]
    assert jnp.allclose(out, emb_ref, atol=1e-1, rtol=1e-1)

    print("KERNEL_OK")
</pallas_src>

<mosaic_0001>
module attributes {stable_mosaic.version = 11 : i64} {
  func.func @encoder_kernel(%arg0: i32, %arg1: i32, %arg2: memref<128x128xbf16, #tpu.memory_space<vmem>>, %arg3: memref<128x512xbf16, #tpu.memory_space<vmem>>, %arg4: memref<512x128xbf16, #tpu.memory_space<vmem>>, %arg5: memref<128x128xbf16, #tpu.memory_space<vmem>>, %arg6: memref<128x128xbf16, #tpu.memory_space<vmem>>, %arg7: memref<128x128xf32, #tpu.memory_space<vmem>>, %arg8: memref<128x128xf32, #tpu.memory_space<vmem>>) attributes {dimension_semantics = [#tpu.dimension_semantics<parallel>, #tpu.dimension_semantics<arbitrary>], iteration_bounds = array<i64: 2, 1>, scalar_prefetch = 0 : i64, scratch_operands = 1 : i64, tpu.core_type = #tpu.core_type<tc>, window_params = [{transform_indices = @transform_0, window_bounds = array<i64: 128, 128>}, {transform_indices = @transform_1, window_bounds = array<i64: 128, 512>}, {transform_indices = @transform_2, window_bounds = array<i64: 512, 128>}, {pipeline_mode = #tpu.pipeline_mode<synchronous>, transform_indices = @transform_3, window_bounds = array<i64: 128, 128>}, {pipeline_mode = #tpu.pipeline_mode<synchronous>, transform_indices = @transform_4, window_bounds = array<i64: 128, 128>}, {transform_indices = @transform_5, window_bounds = array<i64: 128, 128>}]} {
    %c0_i32 = arith.constant 0 : i32
    %0 = arith.cmpi eq, %arg1, %c0_i32 : i32
    %1 = arith.extui %0 : i1 to i32
    %c0_i32_0 = arith.constant 0 : i32
    %2 = arith.cmpi ne, %1, %c0_i32_0 : i32
    scf.if %2 {
      %cst_10 = arith.constant 0.000000e+00 : f32
      %12 = vector.broadcast %cst_10 : f32 to vector<128x128xf32>
      %c0_11 = arith.constant 0 : index
      %c0_12 = arith.constant 0 : index
      %13 = vector.load %arg8[%c0_11, %c0_12] : memref<128x128xf32, #tpu.memory_space<vmem>>, vector<128x128xf32>
      tpu.vector_store %arg8[%c0_11, %c0_12], %12 {strides = array<i32>} : memref<128x128xf32, #tpu.memory_space<vmem>>, vector<128x128xf32>,
    } else {
    }
    %c0 = arith.constant 0 : index
    %c0_1 = arith.constant 0 : index
    %3 = vector.load %arg8[%c0, %c0_1] : memref<128x128xf32, #tpu.memory_space<vmem>>, vector<128x128xf32>
    %c0_2 = arith.constant 0 : index
    %c0_3 = arith.constant 0 : index
    %4 = vector.load %arg3[%c0_2, %c0_3] : memref<128x512xbf16, #tpu.memory_space<vmem>>, vector<128x512xbf16>
    %c0_4 = arith.constant 0 : index
    %c0_5 = arith.constant 0 : index
    %5 = vector.load %arg4[%c0_4, %c0_5] : memref<512x128xbf16, #tpu.memory_space<vmem>>, vector<512x128xbf16>
    %cst = arith.constant dense<0.000000e+00> : vector<128x128xf32>
    %6 = tpu.matmul %4, %5, %cst {dimension_numbers = #tpu.dot_dimension_numbers<[1], [0], [0], [1], [0, 0, 1, 1], [], []>} : vector<128x512xbf16>, vector<512x128xbf16>, vector<128x128xf32> -> vector<128x128xf32>
    %7 = arith.addf %3, %6 : vector<128x128xf32>
    %c0_6 = arith.constant 0 : index
    %c0_7 = arith.constant 0 : index
    %8 = vector.load %arg8[%c0_6, %c0_7] : memref<128x128xf32, #tpu.memory_space<vmem>>, vector<128x128xf32>
    tpu.vector_store %arg8[%c0_6, %c0_7], %7 {strides = array<i32>} : memref<128x128xf32, #tpu.memory_space<vmem>>, vector<128x128xf32>,
    %c0_i32_8 = arith.constant 0 : i32
    %9 = arith.cmpi eq, %arg1, %c0_i32_8 : i32
    %10 = arith.extui %9 : i1 to i32
    %c0_i32_9 = arith.constant 0 : i32
    %11 = arith.cmpi ne, %10, %c0_i32_9 : i32
    scf.if %11 {
      %c0_10 = arith.constant 0 : index
      %c0_11 = arith.constant 0 : index
      %12 = vector.load %arg2[%c0_10, %c0_11] : memref<128x128xbf16, #tpu.memory_space<vmem>>, vector<128x128xbf16>
      %c0_12 = arith.constant 0 : index
      %c0_13 = arith.constant 0 : index
      %13 = vector.load %arg5[%c0_12, %c0_13] : memref<128x128xbf16, #tpu.memory_space<vmem>>, vector<128x128xbf16>
      %cst_14 = arith.constant dense<0.000000e+00> : vector<128x128xf32>
      %14 = tpu.matmul %12, %13, %cst_14 {dimension_numbers = #tpu.dot_dimension_numbers<[1], [0], [0], [1], [0, 0, 1, 1], [], []>} : vector<128x128xbf16>, vector<128x128xbf16>, vector<128x128xf32> -> vector<128x128xf32>
      %c0_15 = arith.constant 0 : index
      %c0_16 = arith.constant 0 : index
      %15 = vector.load %arg8[%c0_15, %c0_16] : memref<128x128xf32, #tpu.memory_space<vmem>>, vector<128x128xf32>
      %16 = arith.truncf %15 : vector<128x128xf32> to vector<128x128xbf16>
      %c0_17 = arith.constant 0 : index
      %c0_18 = arith.constant 0 : index
      %17 = vector.load %arg6[%c0_17, %c0_18] : memref<128x128xbf16, #tpu.memory_space<vmem>>, vector<128x128xbf16>
      %cst_19 = arith.constant dense<0.000000e+00> : vector<128x128xf32>
      %18 = tpu.matmul %16, %17, %cst_19 {dimension_numbers = #tpu.dot_dimension_numbers<[1], [0], [0], [1], [0, 0, 1, 1], [], []>} : vector<128x128xbf16>, vector<128x128xbf16>, vector<128x128xf32> -> vector<128x128xf32>
      %19 = arith.addf %14, %18 : vector<128x128xf32>
      %cst_20 = arith.constant 0.000000e+00 : f32
      %20 = vector.broadcast %cst_20 : f32 to vector<128x128xf32>
      %21 = arith.maximumf %19, %20 : vector<128x128xf32>
      %c0_21 = arith.constant 0 : index
      %c0_22 = arith.constant 0 : index
      %22 = vector.load %arg7[%c0_21, %c0_22] : memref<128x128xf32, #tpu.memory_space<vmem>>, vector<128x128xf32>
      tpu.vector_store %arg7[%c0_21, %c0_22], %21 {strides = array<i32>} : memref<128x128xf32, #tpu.memory_space<vmem>>, vector<128x128xf32>,
    } else {
    }
    return
  }
  func.func @transform_0(%arg0: i32, %arg1: i32) -> (i32, i32) {
    %c0_i32 = arith.constant 0 : i32
    %c0_i32_0 = arith.constant 0 : i32
    return %arg0, %c0_i32 : i32, i32
  }
  func.func @transform_1(%arg0: i32, %arg1: i32) -> (i32, i32) {
    %c0_i32 = arith.constant 0 : i32
    return %arg0, %arg1 : i32, i32
  }
  func.func @transform_2(%arg0: i32, %arg1: i32) -> (i32, i32) {
    %c0_i32 = arith.constant 0 : i32
    %c0_i32_0 = arith.constant 0 : i32
    return %arg1, %c0_i32 : i32, i32
  }
  func.func @transform_3(%arg0: i32, %arg1: i32) -> (i32, i32) {
    %c0_i32 = arith.constant 0 : i32
    %c0_i32_0 = arith.constant 0 : i32
    %c0_i32_1 = arith.constant 0 : i32
    return %c0_i32, %c0_i32_0 : i32, i32
  }
  func.func @transform_4(%arg0: i32, %arg1: i32) -> (i32, i32) {
    %c0_i32 = arith.constant 0 : i32
    %c0_i32_0 = arith.constant 0 : i32
    %c0_i32_1 = arith.constant 0 : i32
    return %c0_i32, %c0_i32_0 : i32, i32
  }
  func.func @transform_5(%arg0: i32, %arg1: i32) -> (i32, i32) {
    %c0_i32 = arith.constant 0 : i32
    %c0_i32_0 = arith.constant 0 : i32
    return %arg0, %c0_i32 : i32, i32
  }
}

</mosaic_0001>

<bundles_post_ra>
// kernel: tpu_custom_call.1
= control target key start
LH: loop header
LB: loop body
LE: loop exit
PB: predicated region body
PF: predicated region fallthrough
CT: control target
= control target key end

     0   :  { %s2956_s0 = inlined_call_operand.hbm [shape: bf16[256,128], index: 0, kind: input, shape index: {}]   ;;  %s2957_s1 = inlined_call_operand.hbm [shape: bf16[256,512], index: 1, kind: input, shape index: {}]   ;;  %s2958_s2 = inlined_call_operand.hbm [shape: bf16[512,128], index: 2, kind: input, shape index: {}]   ;;  %s2959_s3 = inlined_call_operand.hbm [shape: bf16[128,128], index: 3, kind: input, shape index: {}]   ;;  %s2960_s4 = inlined_call_operand.hbm [shape: bf16[128,128], index: 4, kind: input, shape index: {}]   ;;  %s2961_s5 = inlined_call_operand.hbm [shape: f32[256,128], index: 5, kind: output, shape index: {}]  }
   0x1   :  { %2968 = sst [smem:[#allocation19_spill]] %s2956_s0 }
   0x2   :  { %2969 = sst [smem:[#allocation20_spill]] %s2958_s2 }
   0x3   :  { %2970 = sst [smem:[#allocation21_spill]] %s2959_s3 }
   0x4   :  { %2971 = sst [smem:[#allocation22_spill]] %s2960_s4 }
   0x5   :  { %10 = vsyncpa [#allocation4], 0 }
   0x6   :  { %12 = vsyncpa [#allocation4 + $0x1], 0 }
   0x7   :  { %13 = vsyncpa [#allocation7], 0 }
   0x8   :  { %15 = vsyncpa [#allocation7 + $0x1], 0 }
   0x9   :  { %16 = vsyncpa [#allocation10], 0 }
   0xa   :  { %17 = vsyncpa [#allocation5], 0 }
   0xb   :  { %19 = vsyncpa [#allocation5 + $0x1], 0  ;;  %s2527_s18 = smov 0   ;;  %s2529_s19 = smov 0  }
   0xc   :  { %s2531_s20 = smov 0   ;;  %s2533_s21 = smov 0  }
   0xd   :  { %s2535_s22 = smov 0   ;;  %s2537_s23 = smov 0  }
   0xe LB: > { %s2558_s24 = sadd.s32 4294967295, %s2483_s23   ;;  %s1664_s25 = sadd.s32 4294967294, %s2483_s23   ;;  %s2483_s23 = sphi %s2537_s23, %s25_s23   ;;  %s2479_s22 = sphi %s2535_s22, %s3001_s22   ;;  %s2475_s21 = sphi %s2533_s21, %s3000_s21   ;;  %s2471_s20 = sphi %s2531_s20, %s2999_s20   ;;  %s2467_s19 = sphi %s2529_s19, %s2998_s19   ;;  %s2463_s18 = sphi %s2527_s18, %s2997_s18  }
   0xf   : > { %p57_p0 = scmp.ne.s32.totalorder %s2467_s19, %s2463_s18  ;;  %p2962_p1 = scmp.eq.s32.totalorder %s2558_s24, 0 }
  0x10   : > { %p183_p3 = scmp.eq.s32.totalorder %s1664_s25, 1  ;;  %p1665_p5 = scmp.ge.s32.totalorder %s2483_s23, 1 }
  0x11   : > { %p2567_p4 = por %p2962_p1, %p57_p0  ;;  %p190_p7 = scmp.lt.s32.totalorder %s2483_s23, 3 }
  0x12   : > { %p2572_p6 = por %p183_p3, %p57_p0  ;;  %s2485_s29 = smov [#allocation8]  }
  0x13   : > { %s2972_s26 = scalar_select %p2567_p4, 1, 0 }
  0x14   : > { %s2973_s27 = scalar_select %p2572_p6, 1, 0 }
  0x15   : > { %p2577_p8 = pnand %p1665_p5, %p190_p7  ;;  %s205_s30 = sshll.u32 %s2485_s29, 4  ;;  %s2581_s30 = int_to_ptr.vmem [resolvable:$true] %s205_s30 }
  0x16   : > { %2974 = sst [smem:[#allocation18_spill]] %s2973_s27  ;;  %s2486_s7 = smov [#allocation9]  }
  0x17   : > { %s2975_s28 = scalar_select %p2577_p8, 1, 0 }
  0x18   : > { %p2055_p9 = pneg %p2577_p8  ;;  %s218_s8 = sshll.u32 %s2486_s7, 4  ;;  %s2592_s8 = int_to_ptr.vmem [resolvable:$true] %s218_s8 }
  0x19   : > { %s2487_s9 = smov [#allocation11]   ;;  %s2977_s2 = sld [smem:[#allocation20_spill]] }
  0x1a   : > { %p2588_p11 = pnand %p2055_p9, %p2962_p1  ;;  %s2594_s10 = sshll.u32 %s2487_s9, 4  ;;  %s232_s10 = int_to_ptr.vmem [resolvable:$true] %s2594_s10 }
  0x1c   : > { %p2604_p13 = pneg %p2588_p11 }
  0x1f   : > { %s2245_s13 = scalar_lea.hbm %s2977_s2, 4096 }
  0x20   : > { %p2246_p12 = scmp.ne.s32.totalorder %s2977_s2, %s2245_s13  ;;  %p2252_p5 = scmp.lt.u32.totalorder %s2245_s13, %s2977_s2 }
  0x22   : > { %p2248_p0 = pnand %p2604_p13, %p2246_p12 }
  0x24   : > { %p2249_p3 = pneg %p2248_p0 }
  0x26   : > { %p2254_p7 = pnand %p2252_p5, %p2249_p3 }
  0x28   : > { %2257 = shalt.err (!%p2254_p7)
}
  0x29   : > { %s2258_s29 = scalar_lea.vmem %s2581_s30, 4096  ;;  %p2266_p2 = scmp.lt.s32.totalorder %s2581_s30, %s2581_s30 }
  0x2a   : > { %p2259_p9 = scmp.ne.s32.totalorder %s2581_s30, %s2258_s29  ;;  %p2267_p6 = scmp.lt.s32.totalorder %s2258_s29, %s2258_s29 }
  0x2c   : > { %p2261_p10 = pnand %p2259_p9, %p2604_p13  ;;  %p2268_p12 = por %p2267_p6, %p2266_p2 }
  0x2e   : > { %p2262_p1 = pneg %p2261_p10 }
  0x30   : > { %p2269_p0 = pnand %p2268_p12, %p2262_p1 }
  0x32   : > { %2272 = shalt.err (!%p2269_p0)
}
  0x33   : > { %s2966_s7 = smov 64   ;;  %s2967_s9 = smov 4  }
  0x34   : > { %2058 = dma.hbm_to_vmem [thread:$0]  (!%p2588_p11), %s2977_s2, 4096, %s2581_s30, [#allocation7], %s2966_s7, %s2966_s7, %s2967_s9  }
  0x35   : > { %s2979_s3 = sld [smem:[#allocation21_spill]] }
  0x3b   : > { %s2273_s15 = scalar_lea.hbm %s2979_s3, 1024 }
  0x3c   : > { %p2274_p1 = scmp.ne.s32.totalorder %s2979_s3, %s2273_s15  ;;  %p2280_p10 = scmp.lt.u32.totalorder %s2273_s15, %s2979_s3 }
  0x3e   : > { %p2276_p2 = pnand %p2274_p1, %p2604_p13 }
  0x40   : > { %p2277_p6 = pneg %p2276_p2 }
  0x42   : > { %p2282_p3 = pnand %p2280_p10, %p2277_p6 }
  0x44   : > { %2285 = shalt.err (!%p2282_p3)
}
  0x45   : > { %s2286_s30 = scalar_lea.vmem %s2592_s8, 1024  ;;  %p2294_p12 = scmp.lt.s32.totalorder %s2592_s8, %s2592_s8 }
  0x46   : > { %p2287_p5 = scmp.ne.s32.totalorder %s2592_s8, %s2286_s30  ;;  %p2295_p0 = scmp.lt.s32.totalorder %s2286_s30, %s2286_s30 }
  0x48   : > { %p2289_p7 = pnand %p2287_p5, %p2604_p13  ;;  %p2296_p1 = por %p2295_p0, %p2294_p12 }
  0x4a   : > { %p2290_p9 = pneg %p2289_p7 }
  0x4c   : > { %p2297_p2 = pnand %p2296_p1, %p2290_p9 }
  0x4e   : > { %2300 = shalt.err (!%p2297_p2)
}
  0x4f   : > { %2061 = dma.hbm_to_vmem [thread:$0]  (!%p2588_p11), %s2979_s3, 1024, %s2592_s8, [#allocation10], %s2966_s7, %s2966_s7, %s2967_s9  }
  0x50   : > { %s2980_s4 = sld [smem:[#allocation22_spill]] }
  0x56   : > { %s2301_s14 = scalar_lea.hbm %s2980_s4, 1024 }
  0x57   : > { %p2302_p6 = scmp.ne.s32.totalorder %s2980_s4, %s2301_s14  ;;  %p2308_p5 = scmp.lt.u32.totalorder %s2301_s14, %s2980_s4 }
  0x59   : > { %p2304_p10 = pnand %p2302_p6, %p2604_p13 }
  0x5b   : > { %p2305_p3 = pneg %p2304_p10 }
  0x5d   : > { %p2310_p7 = pnand %p2308_p5, %p2305_p3 }
  0x5f   : > { %2313 = shalt.err (!%p2310_p7)
}
  0x60   : > { %s2314_s30 = scalar_lea.vmem %s232_s10, 1024  ;;  %p2322_p1 = scmp.lt.s32.totalorder %s232_s10, %s232_s10 }
  0x61   : > { %p2315_p9 = scmp.ne.s32.totalorder %s232_s10, %s2314_s30  ;;  %p2323_p2 = scmp.lt.s32.totalorder %s2314_s30, %s2314_s30 }
  0x63   : > { %p2317_p12 = pnand %p2315_p9, %p2604_p13  ;;  %p2324_p4 = por %p2323_p2, %p2322_p1 }
  0x65   : > { %p2318_p0 = pneg %p2317_p12 }
  0x67   : > { %p2325_p8 = pnand %p2324_p4, %p2318_p0 }
  0x69   : > { %2328 = shalt.err (!%p2325_p8)
}
  0x6a   : > { %2064 = dma.hbm_to_vmem [thread:$0]  (!%p2588_p11), %s2980_s4, 1024, %s232_s10, [#allocation10], %s2966_s7, %s2966_s7, %s2967_s9  }
  0x6b   : > { %s44_s16 = sadd.s32 1, %s2471_s20  ;;  %s37_s6 = sadd.s32 1, %s2479_s22 }
  0x6c   : > { %p51_p4 = scmp.ne.s32.totalorder %s2471_s20, %s2467_s19  ;;  %p39_p8 = scmp.ge.s32.totalorder %s37_s6, 2 }
  0x6d   : > { %p52_p13 = scmp.eq.s32.totalorder %s2483_s23, 0  ;;  %p2981_p6 = scmp.eq.s32.totalorder %s2558_s24, 1 }
  0x6e   : > { %p2079_p3 = scmp.lt.s32.totalorder %s2483_s23, 2  ;;  %s3003_s6 = smov (%p39_p8, %s37_s6), 0 }
  0x6f   : > { %p2683_p10 = por %p2981_p6, %p51_p4  ;;  %p53_p5 = por %p52_p13, %p51_p4 }
  0x70   : > { %s2691_s12 = sand.u32 1, %s2471_s20   ;;  %s41_s10 = ssub.s32 %s2479_s22, %s3003_s6 }
  0x71   : > { %p42_p11 = scmp.eq.s32.totalorder %s41_s10, 0  ;;  %s1670_s13 = sshll.u32 %s2691_s12, 6 }
  0x72   : > { %s1777_s14 = sshll.u32 %s2479_s22, 10  ;;  %s2983_s0 = sld [smem:[#allocation19_spill]] }
  0x73   : > { %s2698_s15 = scalar_select %p42_p11, %s2471_s20, %s44_s16  }
  0x74   : > { %s249_s30 = scalar_lea.vmem [#allocation3], %s1670_s13  ;;  %p2709_p7 = pnand %p2079_p3, %p53_p5 }
  0x75   : > { %s256_s8 = sshll.u32 %s249_s30, 4  ;;  %s1673_s10 = sshll.u32 %s2691_s12, 8  ;;  %s2705_s8 = int_to_ptr.vmem [resolvable:$true] %s256_s8 }
  0x76   : > { %s246_s17 = scalar_lea.sflag [#allocation4], %s2691_s12  ;;  %p2331_p12 = pneg %p2709_p7 }
  0x78   : > { %s2703_s29 = scalar_lea.hbm %s2983_s0, %s1777_s14  ;;  %s2334_s30 = scalar_lea.hbm %s2983_s0, 2048 }
  0x79   : > { %s2329_s14 = scalar_lea.hbm %s2703_s29, 1024  ;;  %p2335_p2 = scmp.lt.u32.totalorder %s2703_s29, %s2983_s0 }
  0x7a   : > { %p2330_p9 = scmp.ne.s32.totalorder %s2703_s29, %s2329_s14  ;;  %p2336_p4 = scmp.lt.u32.totalorder %s2334_s30, %s2329_s14 }
  0x7b   : > { %p2338_p13 = scmp.lt.u32.totalorder %s2329_s14, %s2703_s29 }
  0x7c   : > { %p2332_p0 = pnand %p2331_p12, %p2330_p9  ;;  %p2337_p8 = por %p2336_p4, %p2335_p2 }
  0x7e   : > { %p2333_p1 = pneg %p2332_p0  ;;  %p2339_p6 = por %p2338_p13, %p2337_p8 }
  0x80   : > { %p2340_p3 = pnand %p2339_p6, %p2333_p1 }
  0x82   : > { %2343 = shalt.err (!%p2340_p3)
}
  0x83   : > { %s2344_s16 = scalar_lea.vmem %s2705_s8, 1024  ;;  %s2490_s13 = smov [#allocation3]  }
  0x84   : > { %p2345_p5 = scmp.ne.s32.totalorder %s2705_s8, %s2344_s16  ;;  %s2349_s25 = sshll.u32 %s2490_s13, 4  ;;  %s2350_s25 = int_to_ptr.vmem [resolvable:$false] %s2349_s25 }
  0x85   : > { %s2351_s7 = scalar_lea.vmem %s2350_s25, 2048  ;;  %p2352_p0 = scmp.lt.s32.totalorder %s2705_s8, %s2350_s25 }
  0x86   : > { %p2347_p11 = pnand %p2345_p5, %p2331_p12  ;;  %p2353_p2 = scmp.lt.s32.totalorder %s2351_s7, %s2344_s16 }
  0x88   : > { %p2348_p9 = pneg %p2347_p11  ;;  %p2354_p4 = por %p2353_p2, %p2352_p0 }
  0x8a   : > { %p2355_p8 = pnand %p2354_p4, %p2348_p9 }
  0x8c   : > { %2358 = shalt.err (!%p2355_p8)
}
  0x8d   : > { %s2985_s9 = smov 4   ;;  %s2986_s14 = smov 64  }
  0x8e   : > { %2068 = dma.hbm_to_vmem [thread:$0]  (!%p2709_p7), %s2703_s29, 1024, %s2705_s8, %s246_s17, %s2986_s14, %s2986_s14, %s2985_s9  }
  0x8f   : > { %s1779_s30 = sshll.u32 %s2479_s22, 12  ;;  %s270_s7 = scalar_lea.vmem [#allocation6], %s1673_s10 }
  0x90   : > { %s2750_s25 = scalar_lea.hbm %s2957_s1, %s1779_s30  ;;  %s280_s0 = sshll.u32 %s270_s7, 4  ;;  %s2754_s0 = int_to_ptr.vmem [resolvable:$true] %s280_s0 }
  0x91   : > { %s2987_s2 = sand.u32 1, %s2483_s23   ;;  %s2359_s4 = scalar_lea.hbm %s2750_s25, 4096 }
  0x92   : > { %s2758_s3 = scalar_lea.sflag [#allocation7], %s2987_s2  ;;  %p2360_p1 = scmp.ne.s32.totalorder %s2750_s25, %s2359_s4 }
  0x93   : > { %s2364_s12 = scalar_lea.hbm %s2957_s1, 8192  ;;  %p2365_p3 = scmp.lt.u32.totalorder %s2750_s25, %s2957_s1 }
  0x94   : > { %p2362_p13 = pnand %p2360_p1, %p2331_p12  ;;  %p2366_p5 = scmp.lt.u32.totalorder %s2364_s12, %s2359_s4 }
  0x95   : > { %p2368_p9 = scmp.lt.u32.totalorder %s2359_s4, %s2750_s25 }
  0x96   : > { %p2363_p6 = pneg %p2362_p13  ;;  %p2367_p11 = por %p2366_p5, %p2365_p3 }
  0x98   : > { %p2369_p0 = por %p2368_p9, %p2367_p11 }
  0x9a   : > { %p2370_p2 = pnand %p2369_p0, %p2363_p6 }
  0x9c   : > { %2373 = shalt.err (!%p2370_p2)
}
  0x9d   : > { %s2374_s2 = scalar_lea.vmem %s2754_s0, 4096  ;;  %s2491_s10 = smov [#allocation6]  }
  0x9e   : > { %p2375_p4 = scmp.ne.s32.totalorder %s2754_s0, %s2374_s2  ;;  %s2379_s14 = sshll.u32 %s2491_s10, 4  ;;  %s2380_s14 = int_to_ptr.vmem [resolvable:$false] %s2379_s14 }
  0x9f   : > { %s2381_s30 = scalar_lea.vmem %s2380_s14, 8192  ;;  %p2382_p13 = scmp.lt.s32.totalorder %s2754_s0, %s2380_s14 }
  0xa0   : > { %p2377_p8 = pnand %p2375_p4, %p2331_p12  ;;  %p2383_p3 = scmp.lt.s32.totalorder %s2381_s30, %s2374_s2 }
  0xa2   : > { %p2378_p1 = pneg %p2377_p8  ;;  %p2384_p5 = por %p2383_p3, %p2382_p13 }
  0xa4   : > { %p2385_p11 = pnand %p2384_p5, %p2378_p1 }
  0xa6   : > { %2388 = shalt.err (!%p2385_p11)
}
  0xa7   : > { %s2492_s4 = smov 256   ;;  %s2493_s13 = smov 16  }
  0xa8   : > { %2071 = dma.hbm_to_vmem [thread:$0]  (!%p2709_p7), %s2750_s25, 4096, %s2754_s0, %s2758_s3, %s2492_s4, %s2492_s4, %s2493_s13  }
  0xa9   : > { %p2988_p12 = scmp.ne.s32.totalorder %s2975_s28, 0 }
  0xaa   : > { %s2787_s16 = sand.u32 (!%p2988_p12), 1, %s2467_s19   ;;  %p2989_p6 = scmp.ne.s32.totalorder (!%p2988_p12), %s2972_s26, 0 }
  0xab   : > { %292 = sbr.rel (%p2988_p12) target bundleno = 794 (0x31a), region = 40  ;;  %s1678_s7 = sshll.u32 (!%p2988_p12), %s2787_s16, 6 }
  0xac   : > { %s295_s29 = scalar_lea.sflag (!%p2988_p12), [#allocation4], %s2787_s16  ;;  %s2791_s8 = scalar_lea.vmem (!%p2988_p12), [#allocation3], %s1678_s7 }
  0xb2   : > { %2442 = dma.done.wait (%p2989_p6), %s295_s29, 1024  }
  0xb3   : > { %2444 = vsyncadd (%p2989_p6), %s295_s29, 4294966272  ;;  %s303_s0 = sand.u32 1, %s2558_s24   ;;  %s1679_s3 = sshll.u32 %s2787_s16, 8 }
  0xb4   : > { %s304_s28 = scalar_lea.sflag [#allocation7], %s303_s0  ;;  %s2799_s27 = scalar_lea.vmem [#allocation6], %s1679_s3 }
  0xb5   : > { %2446 = dma.done.wait (%p2989_p6), %s304_s28, 4096  }
  0xb6   : > { %2448 = vsyncadd (%p2989_p6), %s304_s28, 4294963200  ;;  %p2990_p7 = scmp.eq.s32.totalorder %s2558_s24, 0 }
  0xb8   : > { %2450 = dma.done.wait (%p2990_p7), [#allocation7], 4096   ;;  %p2991_p9 = pmov %p2990_p7 }
  0xb9   : > { %p2992_p0 = pmov %p2990_p7 }
  0xba   : > { %2452 = vsyncadd (%p2991_p9), [#allocation7], 4294963200 }
  0xbb   : > { %2454 = dma.done.wait (%p2992_p0), [#allocation10], 2048   ;;  %p2993_p2 = pmov %p2992_p0 }
  0xbc   : > { %v2141_v0 = vld [vmem:[#allocation8 + $0x40] sm:$0xff]   ;;  %v2143_v2 = vld [vmem:[#allocation8 + $0x48] sm:$0xff]   ;;  %v2145_v4 = vld [vmem:[#allocation8 + $0x50] sm:$0xff]   ;;  %s1683_s24 = sshll.u32 %s2787_s16, 7  ;;  %s1780_s25 = sshll.u32 %s2475_s21, 11 }
  0xbd   : > { %2456 = vsyncadd (%p2993_p2), [#allocation10], 4294965248  ;;  %v2142_v1 = vld [vmem:[#allocation8] sm:$0xff]   ;;  %2005 = vmatprep.subr.bf16.mxu1 %v2141_v0  ;;  %1781 = vmatprep.subr.bf16.mxu0 %v2141_v0  ;;  %v2144_v3 = vld [vmem:[#allocation8 + $0x8] sm:$0xff]   ;;  %s2882_s26 = scalar_lea.vmem [#allocation12], %s1683_s24  ;;  %s2902_s2 = scalar_lea.hbm %s2961_s5, %s1780_s25 }
  0xbe   : > { %2013 = vmatpush3.bf16.msra.mxu1 %v2142_v1  ;;  %1782 = vmatpush3.bf16.msra.mxu0 %v2142_v1  ;;  %v2146_v5 = vld [vmem:[#allocation8 + $0x10] sm:$0xff]   ;;  %v2147_v6 = vld [vmem:[#allocation8 + $0x58] sm:$0xff]   ;;  %v2149_v8 = vld [vmem:[#allocation8 + $0x60] sm:$0xff]   ;;  %s1526_s12 = sshll.u32 %s2882_s26, 4  ;;  %s1513_s21 = scalar_lea.sflag [#allocation5], %s2787_s16  ;;  %s2904_s12 = int_to_ptr.vmem [resolvable:$true] %s1526_s12 }
  0xbf   : > { %2006 = vmatprep.subr.bf16.mxu1 %v2143_v2  ;;  %1783 = vmatprep.subr.bf16.mxu0 %v2143_v2  ;;  %v2148_v7 = vld [vmem:[#allocation8 + $0x18] sm:$0xff]   ;;  %v2150_v9 = vld [vmem:[#allocation8 + $0x20] sm:$0xff]   ;;  %v2151_v10 = vld [vmem:[#allocation8 + $0x68] sm:$0xff]   ;;  %s2389_s10 = scalar_lea.vmem %s2904_s12, 2048  ;;  %s2494_s14 = smov [#allocation12]  }
  0xc0   : > { %v2159_v11 = vld [vmem:[%s2799_s27 + $0x84] ss:$16 sps:$4 sm:$0xff]   ;;  %v2152_v12 = vld [vmem:[#allocation8 + $0x28] sm:$0xff]   ;;  %v2155_v15 = vld [vmem:[#allocation8 + $0x78] sm:$0xff]   ;;  %p2390_p4 = scmp.ne.s32.totalorder %s2904_s12, %s2389_s10  ;;  %s2393_s30 = sshll.u32 %s2494_s14, 4  ;;  %s2394_s30 = int_to_ptr.vmem [resolvable:$false] %s2393_s30 }
  0xc1   : > { %905 = vmatprep.mubr.bf16.mxu1 %v2159_v11  ;;  %v2153_v13 = vld [vmem:[#allocation8 + $0x70] sm:$0xff]   ;;  %v2156_v16 = vld [vmem:[#allocation8 + $0x38] sm:$0xff]   ;;  %v2160_v17 = vld [vmem:[#allocation8 + $0xc0] sm:$0xff]   ;;  %s2395_s4 = scalar_lea.vmem %s2394_s30, 4096  ;;  %p2396_p13 = scmp.lt.s32.totalorder %s2904_s12, %s2394_s30 }
  0xc2   : > { %2014 = vmatpush3.bf16.msra.mxu1 %v2144_v3  ;;  %1784 = vmatpush3.bf16.msra.mxu0 %v2144_v3  ;;  %v2154_v14 = vld [vmem:[#allocation8 + $0x30] sm:$0xff]   ;;  %v2161_v19 = vld [vmem:[#allocation8 + $0x80] sm:$0xff]   ;;  %v2162_v21 = vld [vmem:[#allocation8 + $0xc8] sm:$0xff]   ;;  %p2391_p8 = pnand %p2390_p4, %p2683_p10  ;;  %p2397_p3 = scmp.lt.s32.totalorder %s2395_s4, %s2389_s10 }
  0xc3   : > { %2007 = vmatprep.subr.bf16.mxu1 %v2145_v4  ;;  %1785 = vmatprep.subr.bf16.mxu0 %v2145_v4  ;;  %v2157_v18 = vld [vmem:[%s2799_s27 + $0x80] ss:$16 sps:$4 sm:$0xff]   ;;  %v2164_v20 = vld [vmem:[%s2799_s27 + $0xa4] ss:$16 sps:$4 sm:$0xff]   ;;  %v2163_v22 = vld [vmem:[#allocation8 + $0x88] sm:$0xff]  }
  0xc4   : > { %v2166_v23 = vld [vmem:[%s2799_s27 + $0xa0] ss:$16 sps:$4 sm:$0xff]   ;;  %v2187_v27 = vld [vmem:[%s2799_s27 + $0x4] ss:$16 sps:$4 sm:$0xff]   ;;  %v2169_v28 = vld [vmem:[#allocation8 + $0xd8] sm:$0xff]   ;;  %p2392_p1 = pneg %p2391_p8  ;;  %p2398_p5 = por %p2397_p3, %p2396_p13 }
  0xc5   : > { %v2167_v24 = vld [vmem:[#allocation8 + $0xd0] sm:$0xff]   ;;  %873 = vmatprep.mubr.bf16.mxu0 %v2187_v27  ;;  %v2170_v31 = vld [vmem:[#allocation8 + $0x98] sm:$0xff]   ;;  %v2174_v33 = vld [vmem:[#allocation8 + $0xe0] sm:$0xff]  }
  0xc6   : > { %2015 = vmatpush3.bf16.msra.mxu1 %v2146_v5  ;;  %1786 = vmatpush3.bf16.msra.mxu0 %v2146_v5  ;;  %v2168_v25 = vld [vmem:[#allocation8 + $0x90] sm:$0xff]   ;;  %v2175_v36 = vld [vmem:[#allocation8 + $0xa0] sm:$0xff]   ;;  %v2176_v38 = vld [vmem:[#allocation8 + $0xe8] sm:$0xff]   ;;  %p2399_p11 = pnand %p2398_p5, %p2392_p1 }
  0xc7   : > { %2008 = vmatprep.subr.bf16.mxu1 %v2147_v6  ;;  %1787 = vmatprep.subr.bf16.mxu0 %v2147_v6  ;;  %v2185_v26 = vld [vmem:[%s2799_s27] ss:$16 sps:$4 sm:$0xff]   ;;  %v2171_v29 = vld [vmem:[%s2799_s27 + $0xc4] ss:$16 sps:$4 sm:$0xff]   ;;  %v2177_v39 = vld [vmem:[#allocation8 + $0xa8] sm:$0xff]  }
  0xc8   : > { %v2191_v30 = vld [vmem:[%s2799_s27 + $0x24] ss:$16 sps:$4 sm:$0xff]   ;;  %v2173_v32 = vld [vmem:[%s2799_s27 + $0xc0] ss:$16 sps:$4 sm:$0xff]   ;;  %v2190_v44 = vld [vmem:[%s2799_s27 + $0xc] ss:$16 sps:$4 sm:$0xff]  }
  0xc9   : > { %v2195_v34 = vld [vmem:[%s2799_s27 + $0x20] ss:$16 sps:$4 sm:$0xff]   ;;  %v2197_v35 = vld [vmem:[%s2799_s27 + $0x44] ss:$16 sps:$4 sm:$0xff]   ;;  %v2183_v46 = vld [vmem:[#allocation8 + $0xf8] sm:$0xff]  }
  0xca   : > { %2016 = vmatpush3.bf16.msra.mxu1 %v2148_v7  ;;  %1788 = vmatpush3.bf16.msra.mxu0 %v2148_v7  ;;  %v2178_v37 = vld [vmem:[%s2799_s27 + $0xe4] ss:$16 sps:$4 sm:$0xff]   ;;  %v2180_v41 = vld [vmem:[%s2799_s27 + $0xe0] ss:$16 sps:$4 sm:$0xff]   ;;  %v2184_v47 = vld [vmem:[#allocation8 + $0xb8] sm:$0xff]  }
  0xcb   : > { %2009 = vmatprep.subr.bf16.mxu1 %v2149_v8  ;;  %1789 = vmatprep.subr.bf16.mxu0 %v2149_v8  ;;  %v2181_v40 = vld [vmem:[#allocation8 + $0xf0] sm:$0xff]   ;;  %v2188_v49 = vld [vmem:[%s2799_s27 + $0x8] ss:$16 sps:$4 sm:$0xff]   ;;  %v2193_v50 = vld [vmem:[%s2799_s27 + $0x2c] ss:$16 sps:$4 sm:$0xff]  }
  0xcc   : > { %v2201_v42 = vld [vmem:[%s2799_s27 + $0x40] ss:$16 sps:$4 sm:$0xff]   ;;  %v2203_v45 = vld [vmem:[%s2799_s27 + $0x64] ss:$16 sps:$4 sm:$0xff]   ;;  %v2196_v51 = vld [vmem:[%s2799_s27 + $0x28] ss:$16 sps:$4 sm:$0xff]  }
  0xcd   : > { %v2182_v43 = vld [vmem:[#allocation8 + $0xb0] sm:$0xff]   ;;  %v2199_v52 = vld [vmem:[%s2799_s27 + $0x4c] ss:$16 sps:$4 sm:$0xff]   ;;  %v2202_v53 = vld [vmem:[%s2799_s27 + $0x48] ss:$16 sps:$4 sm:$0xff]  }
  0xce   : > { %2017 = vmatpush3.bf16.msra.mxu1 %v2150_v9  ;;  %1790 = vmatpush3.bf16.msra.mxu0 %v2150_v9  ;;  %v2207_v48 = vld [vmem:[%s2799_s27 + $0x60] ss:$16 sps:$4 sm:$0xff]   ;;  %v2205_v54 = vld [vmem:[%s2799_s27 + $0x6c] ss:$16 sps:$4 sm:$0xff]   ;;  %v2208_v55 = vld [vmem:[%s2799_s27 + $0x68] ss:$16 sps:$4 sm:$0xff]  }
  0xcf   : > { %2010 = vmatprep.subr.bf16.mxu1 %v2151_v10  ;;  %1791 = vmatprep.subr.bf16.mxu0 %v2151_v10  ;;  %v2209_v56 = vld [vmem:[%s2799_s27 + $0x8c] ss:$16 sps:$4 sm:$0xff]   ;;  %v2211_v57 = vld [vmem:[%s2799_s27 + $0x88] ss:$16 sps:$4 sm:$0xff]   ;;  %v2221_v0 = vld [vmem:[#allocation11] sm:$0xff]  }
  0xd0   : > { %v2212_v58 = vld [vmem:[%s2799_s27 + $0xac] ss:$16 sps:$4 sm:$0xff]   ;;  %v2214_v59 = vld [vmem:[%s2799_s27 + $0xa8] ss:$16 sps:$4 sm:$0xff]   ;;  %v2223_v2 = vld [vmem:[#allocation11 + $0x10] sm:$0xff]  }
  0xd1   : > { %v2215_v60 = vld [vmem:[%s2799_s27 + $0xcc] ss:$16 sps:$4 sm:$0xff]   ;;  %v2217_v61 = vld [vmem:[%s2799_s27 + $0xc8] ss:$16 sps:$4 sm:$0xff]   ;;  %v2225_v4 = vld [vmem:[#allocation11 + $0x20] sm:$0xff]  }
  0xd2   : > { %2018 = vmatpush3.bf16.msra.mxu1 %v2152_v12  ;;  %1792 = vmatpush3.bf16.msra.mxu0 %v2152_v12  ;;  %v2218_v62 = vld [vmem:[%s2799_s27 + $0xec] ss:$16 sps:$4 sm:$0xff]   ;;  %v2220_v63 = vld [vmem:[%s2799_s27 + $0xe8] ss:$16 sps:$4 sm:$0xff]   ;;  %v2227_v6 = vld [vmem:[#allocation11 + $0x30] sm:$0xff]  }
  0xd3   : > { %2011 = vmatprep.subr.bf16.mxu1 %v2153_v13  ;;  %1793 = vmatprep.subr.bf16.mxu0 %v2153_v13  ;;  %v2222_v1 = vld [vmem:[#allocation11 + $0x8] sm:$0xff]   ;;  %v2224_v3 = vld [vmem:[#allocation11 + $0x18] sm:$0xff]   ;;  %v2845_v8 = vld [vmem:[#allocation9] sm:$0xff]  }
  0xd4   : > { %v2226_v5 = vld [vmem:[#allocation11 + $0x28] sm:$0xff]   ;;  %v2228_v7 = vld [vmem:[#allocation11 + $0x38] sm:$0xff]  }
  0xd6   : > { %2019 = vmatpush3.bf16.msra.mxu1 %v2154_v14  ;;  %1794 = vmatpush3.bf16.msra.mxu0 %v2154_v14 }
  0xd7   : > { %2012 = vmatprep.subr.bf16.mxu1 %v2155_v15  ;;  %1795 = vmatprep.subr.bf16.mxu0 %v2155_v15 }
  0xda   : > { %2020 = vmatpush3.bf16.msra.mxu1 %v2156_v16  ;;  %1796 = vmatpush3.bf16.msra.mxu0 %v2156_v16 }
  0xdb   : > { %1845 = vmatprep.subr.bf16.mxu1 %v2160_v17  ;;  %1941 = vmatprep.subr.bf16.mxu0 %v2221_v0 }
  0xdd   : > { %906 = vmatmul.mubr.bf16.vlgmr.msra.gmra.mrb[0].mxu1 %v2157_v18  ;;  %874 = vmatmul.mubr.bf16.vlgmr.msra.gmra.mrb[0].mxu0 %v2185_v26 }
  0xde   : > { %1846 = vmatpush3.bf16.msra.mxu1 %v2161_v19  ;;  %913 = vmatprep.mubr.bf16.mxu1 %v2164_v20 }
  0xdf   : > { %1847 = vmatprep.subr.bf16.mxu1 %v2162_v21  ;;  %881 = vmatprep.mubr.bf16.mxu0 %v2191_v30 }
  0xe0   : > { %1942 = vmatpush3.bf16.msra.mxu0 %v2221_v0 }
  0xe1   : > { %1943 = vmatprep.subr.bf16.mxu0 %v2222_v1 }
  0xe2   : > { %1848 = vmatpush3.bf16.msra.mxu1 %v2163_v22 }
  0xe3   : > { %1849 = vmatprep.subr.bf16.mxu1 %v2167_v24 }
  0xe4   : > { %1944 = vmatpush3.bf16.msra.mxu0 %v2222_v1 }
  0xe5   : > { %914 = vmatmul.mubr.bf16.gmra.mrb[4].mxu1 %v2166_v23  ;;  %882 = vmatmul.mubr.bf16.gmra.mrb[4].mxu0 %v2195_v34 }
  0xe6   : > { %1850 = vmatpush3.bf16.msra.mxu1 %v2168_v25  ;;  %921 = vmatprep.mubr.bf16.mxu1 %v2171_v29 }
  0xe7   : > { %1851 = vmatprep.subr.bf16.mxu1 %v2169_v28  ;;  %889 = vmatprep.mubr.bf16.mxu0 %v2197_v35 }
  0xe8   : > { %1945 = vmatprep.subr.bf16.mxu0 %v2223_v2 }
  0xe9   : > { %1946 = vmatpush3.bf16.msra.mxu0 %v2223_v2 }
  0xea   : > { %1852 = vmatpush3.bf16.msra.mxu1 %v2170_v31  ;;  %1947 = vmatprep.subr.bf16.mxu0 %v2224_v3 }
  0xeb   : > { %1853 = vmatprep.subr.bf16.mxu1 %v2174_v33 }
  0xed   : > { %922 = vmatmul.mubr.bf16.gmra.mrb[8].mxu1 %v2173_v32  ;;  %890 = vmatmul.mubr.bf16.gmra.mrb[8].mxu0 %v2201_v42 }
  0xee   : > { %1854 = vmatpush3.bf16.msra.mxu1 %v2175_v36  ;;  %929 = vmatprep.mubr.bf16.mxu1 %v2178_v37 }
  0xef   : > { %1855 = vmatprep.subr.bf16.mxu1 %v2176_v38  ;;  %897 = vmatprep.mubr.bf16.mxu0 %v2203_v45 }
  0xf0   : > { %1948 = vmatpush3.bf16.msra.mxu0 %v2224_v3 }
  0xf1   : > { %1949 = vmatprep.subr.bf16.mxu0 %v2225_v4 }
  0xf2   : > { %1856 = vmatpush3.bf16.msra.mxu1 %v2177_v39 }
  0xf3   : > { %1857 = vmatprep.subr.bf16.mxu1 %v2181_v40 }
  0xf4   : > { %1950 = vmatpush3.bf16.msra.mxu0 %v2225_v4 }
  0xf5   : > { %930 = vmatmul.mubr.bf16.gmra.mrb[12].mxu1 %v2180_v41  ;;  %898 = vmatmul.mubr.bf16.gmra.mrb[12].mxu0 %v2207_v48 }
  0xf6   : > { %1858 = vmatpush3.bf16.msra.mxu1 %v2182_v43  ;;  %970 = vmatprep.mubr.bf16.mxu1 %v2190_v44 }
  0xf7   : > { %1859 = vmatprep.subr.bf16.mxu1 %v2183_v46  ;;  %1951 = vmatprep.subr.bf16.mxu0 %v2226_v5 }
  0xf8   : > { %1952 = vmatpush3.bf16.msra.mxu0 %v2226_v5 }
  0xf9   : > { %1953 = vmatprep.subr.bf16.mxu0 %v2227_v6 }
  0xfa   : > { %1860 = vmatpush3.bf16.msra.mxu1 %v2184_v47 }
  0xfc   : > { %1954 = vmatpush3.bf16.msra.mxu0 %v2227_v6 }
  0xfd   : > { %971 = vmatmul.mubr.bf16.vlgmr.msra.gmra.mrb[16].mxu1 %v2188_v49  ;;  %1955 = vmatprep.subr.bf16.mxu0 %v2228_v7 }
  0xfe   : > { %978 = vmatprep.mubr.bf16.mxu1 %v2193_v50 }
 0x100   : > { %1956 = vmatpush3.bf16.msra.mxu0 %v2228_v7 }
 0x101   : > { %1973 = vmatprep.subr.bf16.mxu0 %v2845_v8 }
 0x105   : > { %979 = vmatmul.mubr.bf16.gmra.mrb[20].mxu1 %v2196_v51 }
 0x106   : > { %986 = vmatprep.mubr.bf16.mxu1 %v2199_v52 }
 0x10d   : > { %987 = vmatmul.mubr.bf16.gmra.mrb[24].mxu1 %v2202_v53 }
 0x10e   : > { %994 = vmatprep.mubr.bf16.mxu1 %v2205_v54 }
 0x115   : > { %995 = vmatmul.mubr.bf16.gmra.mrb[28].mxu1 %v2208_v55 }
 0x116   : > { %1002 = vmatprep.mubr.bf16.mxu1 %v2209_v56 }
 0x11d   : > { %1003 = vmatmul.mubr.bf16.gmra.mrb[32].mxu1 %v2211_v57 }
 0x11e   : > { %1010 = vmatprep.mubr.bf16.mxu1 %v2212_v58 }
 0x125   : > { %1011 = vmatmul.mubr.bf16.gmra.mrb[36].mxu1 %v2214_v59 }
 0x126   : > { %1018 = vmatprep.mubr.bf16.mxu1 %v2215_v60 }
 0x12d   : > { %1019 = vmatmul.mubr.bf16.gmra.mrb[40].mxu1 %v2217_v61 }
 0x12e   : > { %1026 = vmatprep.mubr.bf16.mxu1 %v2218_v62 }
 0x135   : > { %1027 = vmatmul.mubr.bf16.gmra.mrb[44].mxu1 %v2220_v63 }
 0x1b0   : > { %v1821_v9 = vpop.f32.mrb[0].mxu1  ;;  %v1797_v15 = vpop.f32.mrb[0].mxu0 }
 0x1b1   : > { %v1822_v10 = vpop.f32.mrb[1].mxu1  ;;  %v1798_v17 = vpop.f32.mrb[1].mxu0 }
 0x1b2   : > { %v2848_v11 = vadd.f32 %v1822_v10, %v1821_v9  ;;  %v1824_v12 = vpop.f32.mrb[2].mxu1  ;;  %v1799_v19 = vadd.f32 %v1798_v17, %v1797_v15  ;;  %v1800_v20 = vpop.f32.mrb[2].mxu0  ;;  %v2230_v15 = vld [vmem:[#allocation9 + $0x8] sm:$0xff]  }
 0x1b3   : > { %v1825_v13 = vpop.f32.mrb[3].mxu1  ;;  %v1801_v23 = vpop.f32.mrb[3].mxu0 }
 0x1b4   : > { %v2850_v14 = vadd.f32 %v1825_v13, %v1824_v12  ;;  %v1802_v25 = vadd.f32 %v1801_v23, %v1800_v20  ;;  %v2231_v23 = vld [vmem:[#allocation9 + $0x10] sm:$0xff]  }
 0x1b8   : > { %v1827_v16 = vpop.f32.mrb[4].mxu1  ;;  %v1803_v27 = vpop.f32.mrb[4].mxu0 }
 0x1b9   : > { %v1828_v18 = vpop.f32.mrb[5].mxu1  ;;  %v1804_v29 = vpop.f32.mrb[5].mxu0 }
 0x1ba   : > { %v2852_v21 = vadd.f32 %v1828_v18, %v1827_v16  ;;  %v1830_v22 = vpop.f32.mrb[6].mxu1  ;;  %v1805_v31 = vadd.f32 %v1804_v29, %v1803_v27  ;;  %v1806_v32 = vpop.f32.mrb[6].mxu0 }
 0x1bb   : > { %v1831_v24 = vpop.f32.mrb[7].mxu1  ;;  %v1807_v35 = vpop.f32.mrb[7].mxu0 }
 0x1bc   : > { %v2854_v26 = vadd.f32 %v1831_v24, %v1830_v22  ;;  %v1808_v37 = vadd.f32 %v1807_v35, %v1806_v32 }
 0x1c0   : > { %v1833_v28 = vpop.f32.mrb[8].mxu1  ;;  %v1809_v39 = vpop.f32.mrb[8].mxu0 }
 0x1c1   : > { %v1834_v30 = vpop.f32.mrb[9].mxu1  ;;  %v1810_v41 = vpop.f32.mrb[9].mxu0 }
 0x1c2   : > { %v2856_v33 = vadd.f32 %v1834_v30, %v1833_v28  ;;  %v1836_v34 = vpop.f32.mrb[10].mxu1  ;;  %v1811_v43 = vadd.f32 %v1810_v41, %v1809_v39  ;;  %v1812_v44 = vpop.f32.mrb[10].mxu0  ;;  %v2232_v28 = vld [vmem:[#allocation9 + $0x18] sm:$0xff]  }
 0x1c3   : > { %v1837_v36 = vpop.f32.mrb[11].mxu1  ;;  %v1813_v47 = vpop.f32.mrb[11].mxu0 }
 0x1c4   : > { %v2858_v38 = vadd.f32 %v1837_v36, %v1836_v34  ;;  %v1814_v49 = vadd.f32 %v1813_v47, %v1812_v44 }
 0x1c8   : > { %v1839_v40 = vpop.f32.mrb[12].mxu1  ;;  %v1815_v51 = vpop.f32.mrb[12].mxu0 }
 0x1c9   : > { %v1840_v42 = vpop.f32.mrb[13].mxu1  ;;  %v1816_v53 = vpop.f32.mrb[13].mxu0 }
 0x1ca   : > { %v2860_v45 = vadd.f32 %v1840_v42, %v1839_v40  ;;  %v1842_v46 = vpop.f32.mrb[14].mxu1  ;;  %v1817_v55 = vadd.f32 %v1816_v53, %v1815_v51  ;;  %v1818_v56 = vpop.f32.mrb[14].mxu0  ;;  %v2234_v40 = vld [vmem:[#allocation9 + $0x28] sm:$0xff]   ;;  %v2236_v53 = vld [vmem:[#allocation9 + $0x38] sm:$0xff]  }
 0x1cb   : > { %v1843_v48 = vpop.f32.mrb[15].mxu1  ;;  %v1819_v59 = vpop.f32.mrb[15].mxu0 }
 0x1cc   : > { %v2862_v50 = vadd.f32 %v1843_v48, %v1842_v46  ;;  %v1820_v61 = vadd.f32 %v1819_v59, %v1818_v56  ;;  %v2235_v48 = vld [vmem:[#allocation9 + $0x30] sm:$0xff]  }
 0x1d0   : > { %v1861_v52 = vpop.f32.mrb[16].mxu1 }
 0x1d1   : > { %v1862_v54 = vpop.f32.mrb[17].mxu1 }
 0x1d2   : > { %v1863_v57 = vadd.f32 %v1862_v54, %v1861_v52  ;;  %v1864_v58 = vpop.f32.mrb[18].mxu1 }
 0x1d3   : > { %v1865_v60 = vpop.f32.mrb[19].mxu1 }
 0x1d4   : > { %v973_v62 = vadd.f32 %v1863_v57, %v1799_v19  ;;  %v1866_v63 = vadd.f32 %v1865_v60, %v1864_v58 }
 0x1d6   : > { %v976_v0 = vadd.f32 %v1866_v63, %v1802_v25 }
 0x1d8   : > { %v1867_v1 = vpop.f32.mrb[20].mxu1  ;;  %v1118_v2 = vpack.c.bf16 %v976_v0, %v973_v62 }
 0x1d9   : > { %v1868_v3 = vpop.f32.mrb[21].mxu1 }
 0x1da   : > { %v1869_v4 = vadd.f32 %v1868_v3, %v1867_v1  ;;  %v1870_v5 = vpop.f32.mrb[22].mxu1  ;;  %1957 = vmatprep.mubr.bf16.mxu0 %v1118_v2 }
 0x1db   : > { %v1871_v6 = vpop.f32.mrb[23].mxu1 }
 0x1dc   : > { %v981_v7 = vadd.f32 %v1869_v4, %v1805_v31  ;;  %v1872_v9 = vadd.f32 %v1871_v6, %v1870_v5 }
 0x1de   : > { %v984_v10 = vadd.f32 %v1872_v9, %v1808_v37 }
 0x1e0   : > { %v1119_v12 = vpack.c.bf16 %v984_v10, %v981_v7  ;;  %v1873_v13 = vpop.f32.mrb[24].mxu1 }
 0x1e1   : > { %v1874_v16 = vpop.f32.mrb[25].mxu1 }
 0x1e2   : > { %v1875_v17 = vadd.f32 %v1874_v16, %v1873_v13  ;;  %v1876_v18 = vpop.f32.mrb[26].mxu1  ;;  %1958 = vmatmul.mubr.bf16.vlgmr.msra.gmra.mrb[16].mxu0 %v1119_v12  ;;  %v2237_v12 = vld [vmem:[%s2791_s8] sm:$0xff]   ;;  %v2238_v13 = vld [vmem:[%s2791_s8 + $0x8] sm:$0xff]   ;;  %v2240_v16 = vld [vmem:[%s2791_s8 + $0x18] sm:$0xff]  }
 0x1e3   : > { %v1877_v19 = vpop.f32.mrb[27].mxu1  ;;  %1974 = vmatpush3.bf16.msra.mxu0 %v2845_v8  ;;  %v2233_v8 = vld [vmem:[#allocation9 + $0x20] sm:$0xff]  }
 0x1e4   : > { %v989_v20 = vadd.f32 %v1875_v17, %v1811_v43  ;;  %v1878_v22 = vadd.f32 %v1877_v19, %v1876_v18  ;;  %1975 = vmatprep.subr.bf16.mxu0 %v2230_v15  ;;  %v2241_v17 = vld [vmem:[%s2791_s8 + $0x20] sm:$0xff]   ;;  %v2242_v18 = vld [vmem:[%s2791_s8 + $0x28] sm:$0xff]   ;;  %v2244_v19 = vld [vmem:[%s2791_s8 + $0x38] sm:$0xff]  }
 0x1e6   : > { %v992_v24 = vadd.f32 %v1878_v22, %v1814_v49 }
 0x1e7   : > { %1976 = vmatpush3.bf16.msra.mxu0 %v2230_v15  ;;  %v2239_v15 = vld [vmem:[%s2791_s8 + $0x10] sm:$0xff]  }
 0x1e8   : > { %v1879_v25 = vpop.f32.mrb[28].mxu1  ;;  %v1120_v27 = vpack.c.bf16 %v992_v24, %v989_v20  ;;  %1977 = vmatprep.subr.bf16.mxu0 %v2231_v23 }
 0x1e9   : > { %v1880_v29 = vpop.f32.mrb[29].mxu1 }
 0x1ea   : > { %v1881_v30 = vadd.f32 %v1880_v29, %v1879_v25  ;;  %v1882_v31 = vpop.f32.mrb[30].mxu1  ;;  %1961 = vmatprep.mubr.bf16.mxu0 %v1120_v27 }
 0x1eb   : > { %v1883_v32 = vpop.f32.mrb[31].mxu1  ;;  %1978 = vmatpush3.bf16.msra.mxu0 %v2231_v23 }
 0x1ec   : > { %v997_v34 = vadd.f32 %v1881_v30, %v1817_v55  ;;  %v1884_v35 = vadd.f32 %v1883_v32, %v1882_v31  ;;  %1979 = vmatprep.subr.bf16.mxu0 %v2232_v28 }
 0x1ee   : > { %v1000_v36 = vadd.f32 %v1884_v35, %v1820_v61 }
 0x1ef   : > { %1980 = vmatpush3.bf16.msra.mxu0 %v2232_v28 }
 0x1f0   : > { %v1885_v37 = vpop.f32.mrb[32].mxu1  ;;  %v1121_v39 = vpack.c.bf16 %v1000_v36, %v997_v34  ;;  %1981 = vmatprep.subr.bf16.mxu0 %v2233_v8 }
 0x1f1   : > { %v1886_v41 = vpop.f32.mrb[33].mxu1 }
 0x1f2   : > { %v1887_v42 = vadd.f32 %v1886_v41, %v1885_v37  ;;  %v1888_v43 = vpop.f32.mrb[34].mxu1  ;;  %1962 = vmatmul.mubr.bf16.gmra.mrb[20].mxu0 %v1121_v39 }
 0x1f3   : > { %v1889_v44 = vpop.f32.mrb[35].mxu1  ;;  %1982 = vmatpush3.bf16.msra.mxu0 %v2233_v8 }
 0x1f4   : > { %v1005_v46 = vadd.f32 %v1887_v42, %v2848_v11  ;;  %v1890_v47 = vadd.f32 %v1889_v44, %v1888_v43  ;;  %1983 = vmatprep.subr.bf16.mxu0 %v2234_v40 }
 0x1f6   : > { %v1008_v49 = vadd.f32 %v1890_v47, %v2850_v14 }
 0x1f7   : > { %1984 = vmatpush3.bf16.msra.mxu0 %v2234_v40 }
 0x1f8   : > { %v1891_v51 = vpop.f32.mrb[36].mxu1  ;;  %v1122_v52 = vpack.c.bf16 %v1008_v49, %v1005_v46  ;;  %1985 = vmatprep.subr.bf16.mxu0 %v2235_v48 }
 0x1f9   : > { %v1892_v54 = vpop.f32.mrb[37].mxu1 }
 0x1fa   : > { %v1893_v55 = vadd.f32 %v1892_v54, %v1891_v51  ;;  %v1894_v56 = vpop.f32.mrb[38].mxu1  ;;  %1965 = vmatprep.mubr.bf16.mxu0 %v1122_v52 }
 0x1fb   : > { %v1895_v57 = vpop.f32.mrb[39].mxu1  ;;  %1986 = vmatpush3.bf16.msra.mxu0 %v2235_v48 }
 0x1fc   : > { %v1013_v58 = vadd.f32 %v1893_v55, %v2852_v21  ;;  %v1896_v59 = vadd.f32 %v1895_v57, %v1894_v56  ;;  %1987 = vmatprep.subr.bf16.mxu0 %v2236_v53 }
 0x1fe   : > { %v1016_v11 = vadd.f32 %v1896_v59, %v2854_v26 }
 0x1ff   : > { %1988 = vmatpush3.bf16.msra.mxu0 %v2236_v53 }
 0x200   : > { %v1897_v60 = vpop.f32.mrb[40].mxu1  ;;  %v1123_v14 = vpack.c.bf16 %v1016_v11, %v1013_v58 }
 0x201   : > { %v1898_v61 = vpop.f32.mrb[41].mxu1 }
 0x202   : > { %v1899_v62 = vadd.f32 %v1898_v61, %v1897_v60  ;;  %v1900_v63 = vpop.f32.mrb[42].mxu1  ;;  %1966 = vmatmul.mubr.bf16.gmra.mrb[24].mxu0 %v1123_v14 }
 0x203   : > { %v1901_v0 = vpop.f32.mrb[43].mxu1 }
 0x204   : > { %v1021_v1 = vadd.f32 %v1899_v62, %v2856_v33  ;;  %v1902_v2 = vadd.f32 %v1901_v0, %v1900_v63 }
 0x206   : > { %v1024_v3 = vadd.f32 %v1902_v2, %v2858_v38 }
 0x208   : > { %v1903_v21 = vpop.f32.mrb[44].mxu1  ;;  %v1124_v4 = vpack.c.bf16 %v1024_v3, %v1021_v1 }
 0x209   : > { %v1904_v5 = vpop.f32.mrb[45].mxu1 }
 0x20a   : > { %v1905_v26 = vadd.f32 %v1904_v5, %v1903_v21  ;;  %v1906_v6 = vpop.f32.mrb[46].mxu1  ;;  %1969 = vmatprep.mubr.bf16.mxu0 %v1124_v4 }
 0x20b   : > { %v1907_v7 = vpop.f32.mrb[47].mxu1 }
 0x20c   : > { %v1029_v9 = vadd.f32 %v1905_v26, %v2860_v45  ;;  %v1908_v10 = vadd.f32 %v1907_v7, %v1906_v6  ;;  %v2243_v45 = vld [vmem:[%s2791_s8 + $0x30] sm:$0xff]  }
 0x20e   : > { %v1032_v33 = vadd.f32 %v1908_v10, %v2862_v50 }
 0x210   : > { %v1125_v38 = vpack.c.bf16 %v1032_v33, %v1029_v9 }
 0x212   : > { %1970 = vmatmul.mubr.bf16.gmra.mrb[28].mxu0 %v1125_v38 }
 0x213   : > { %1989 = vmatprep.mubr.bf16.mxu0 %v2237_v12 }
 0x21a   : > { %1990 = vmatmul.mubr.bf16.vlgmr.msra.gmra.mrb[16].mxu0 %v2238_v13 }
 0x21b   : > { %1993 = vmatprep.mubr.bf16.mxu0 %v2239_v15 }
 0x222   : > { %1994 = vmatmul.mubr.bf16.gmra.mrb[20].mxu0 %v2240_v16 }
 0x223   : > { %1997 = vmatprep.mubr.bf16.mxu0 %v2241_v17 }
 0x22a   : > { %1998 = vmatmul.mubr.bf16.gmra.mrb[24].mxu0 %v2242_v18 }
 0x22b   : > { %2001 = vmatprep.mubr.bf16.mxu0 %v2243_v45 }
 0x232   : > { %2002 = vmatmul.mubr.bf16.gmra.mrb[28].mxu0 %v2244_v19 }
 0x2ed   : > { %v1991_v50 = vpop.f32.mrb[16].mxu0 }
 0x2ee   : > { %v1482_v20 = vmax.f32 %v1991_v50, 0.0  ;;  %v1417_v22 = vpop.f32.mrb[17].mxu0 }
 0x2ef   : > { %v1480_v23 = vmax.f32 %v1417_v22, 0.0  ;;  %v1992_v24 = vpop.f32.mrb[18].mxu0 }
 0x2f0   : > { %1498 = vst [vmem:[%s2882_s26 + $0x10] sm:$0xff] %v1482_v20  ;;  %v1483_v25 = vmax.f32 %v1992_v24, 0.0  ;;  %v1420_v27 = vpop.f32.mrb[19].mxu0 }
 0x2f1   : > { %1496 = vst [vmem:[%s2882_s26] sm:$0xff] %v1480_v23  ;;  %v1481_v28 = vmax.f32 %v1420_v27, 0.0 }
 0x2f2   : > { %1499 = vst [vmem:[%s2882_s26 + $0x18] sm:$0xff] %v1483_v25 }
 0x2f3   : > { %1497 = vst [vmem:[%s2882_s26 + $0x8] sm:$0xff] %v1481_v28 }
 0x2f5   : > { %v1995_v29 = vpop.f32.mrb[20].mxu0 }
 0x2f6   : > { %v1486_v30 = vmax.f32 %v1995_v29, 0.0  ;;  %v1433_v31 = vpop.f32.mrb[21].mxu0 }
 0x2f7   : > { %v1484_v32 = vmax.f32 %v1433_v31, 0.0  ;;  %v1996_v34 = vpop.f32.mrb[22].mxu0 }
 0x2f8   : > { %1502 = vst [vmem:[%s2882_s26 + $0x30] sm:$0xff] %v1486_v30  ;;  %v1487_v35 = vmax.f32 %v1996_v34, 0.0  ;;  %v1436_v8 = vpop.f32.mrb[23].mxu0 }
 0x2f9   : > { %1500 = vst [vmem:[%s2882_s26 + $0x20] sm:$0xff] %v1484_v32  ;;  %v1485_v36 = vmax.f32 %v1436_v8, 0.0 }
 0x2fa   : > { %1503 = vst [vmem:[%s2882_s26 + $0x38] sm:$0xff] %v1487_v35 }
 0x2fb   : > { %1501 = vst [vmem:[%s2882_s26 + $0x28] sm:$0xff] %v1485_v36 }
 0x2fd   : > { %v1999_v37 = vpop.f32.mrb[24].mxu0 }
 0x2fe   : > { %v1490_v39 = vmax.f32 %v1999_v37, 0.0  ;;  %v1449_v40 = vpop.f32.mrb[25].mxu0 }
 0x2ff   : > { %v1488_v41 = vmax.f32 %v1449_v40, 0.0  ;;  %v2000_v42 = vpop.f32.mrb[26].mxu0 }
 0x300   : > { %1506 = vst [vmem:[%s2882_s26 + $0x50] sm:$0xff] %v1490_v39  ;;  %v1491_v43 = vmax.f32 %v2000_v42, 0.0  ;;  %v1452_v44 = vpop.f32.mrb[27].mxu0 }
 0x301   : > { %1504 = vst [vmem:[%s2882_s26 + $0x40] sm:$0xff] %v1488_v41  ;;  %v1489_v46 = vmax.f32 %v1452_v44, 0.0 }
 0x302   : > { %1507 = vst [vmem:[%s2882_s26 + $0x58] sm:$0xff] %v1491_v43 }
 0x303   : > { %1505 = vst [vmem:[%s2882_s26 + $0x48] sm:$0xff] %v1489_v46 }
 0x305   : > { %v2003_v47 = vpop.f32.mrb[28].mxu0 }
 0x306   : > { %v1494_v48 = vmax.f32 %v2003_v47, 0.0  ;;  %v1465_v49 = vpop.f32.mrb[29].mxu0 }
 0x307   : > { %v1492_v51 = vmax.f32 %v1465_v49, 0.0  ;;  %v2004_v52 = vpop.f32.mrb[30].mxu0 }
 0x308   : > { %1510 = vst [vmem:[%s2882_s26 + $0x70] sm:$0xff] %v1494_v48  ;;  %v1495_v53 = vmax.f32 %v2004_v52, 0.0  ;;  %v1468_v54 = vpop.f32.mrb[31].mxu0 }
 0x309   : > { %1508 = vst [vmem:[%s2882_s26 + $0x60] sm:$0xff] %v1492_v51  ;;  %v1493_v55 = vmax.f32 %v1468_v54, 0.0 }
 0x30a   : > { %1511 = vst [vmem:[%s2882_s26 + $0x78] sm:$0xff] %v1495_v53 }
 0x30b   : > { %1509 = vst [vmem:[%s2882_s26 + $0x68] sm:$0xff] %v1493_v55 }
 0x30c   : > { %2402 = shalt.err (!%p2399_p11)
}
 0x30d   : > { %s2403_s13 = scalar_lea.hbm %s2902_s2, 2048  ;;  %s2407_s8 = scalar_lea.hbm %s2961_s5, 4096 }
 0x30e   : > { %p2404_p12 = scmp.ne.s32.totalorder %s2902_s2, %s2403_s13  ;;  %p2408_p9 = scmp.lt.u32.totalorder %s2902_s2, %s2961_s5 }
 0x30f   : > { %p2409_p0 = scmp.lt.u32.totalorder %s2407_s8, %s2403_s13  ;;  %p2411_p4 = scmp.lt.u32.totalorder %s2403_s13, %s2902_s2 }
 0x310   : > { %p2405_p6 = pnand %p2404_p12, %p2683_p10 }
 0x311   : > { %p2410_p2 = por %p2409_p0, %p2408_p9 }
 0x312   : > { %p2406_p7 = pneg %p2405_p6 }
 0x313   : > { %p2412_p8 = por %p2411_p4, %p2410_p2 }
 0x315   : > { %p2413_p1 = pnand %p2412_p8, %p2406_p7 }
 0x317   : > { %2416 = shalt.err (!%p2413_p1)
}
 0x318   : > { %s2495_s28 = smov 128   ;;  %s2496_s27 = smov 8  }
 0x319   : > { %2053 = dma.vmem_to_hbm [thread:$0]  (%p2683_p10), %s2904_s12, 2048, %s2902_s2, %s1513_s21, %s2495_s28, %s2495_s28, %s2496_s27  }
 0x31a PF: > { %s2994_s24 = sld [smem:[#allocation18_spill]]  ;;  %s1541_s26 = sand.u32 1, %s2463_s18  }
 0x31b   : > { %p2996_p3 = scmp.ge.s32.totalorder %s2483_s23, 2  ;;  %s1542_s25 = scalar_lea.sflag [#allocation5], %s1541_s26 }
 0x320   : > { %p2995_p13 = scmp.ne.s32.totalorder %s2994_s24, 0 }
 0x322   : > { %p2073_p5 = pnand %p2996_p3, %p2995_p13 }
 0x324   : > { %2458 = dma.done.wait (!%p2073_p5), %s1542_s25, 2048  }
 0x325   : > { %2460 = vsyncadd (!%p2073_p5), %s1542_s25, 4294965248  ;;  %s25_s23 = sadd.s32 1, %s2483_s23   ;;  %s2997_s18 = smov %s2467_s19 }
 0x326   : > { %p22_p11 = scmp.ge.s32.totalorder %s25_s23, 4   ;;  %s2998_s19 = smov %s2471_s20 }
 0x327   : > { %s2999_s20 = smov %s2698_s15  ;;  %s3000_s21 = smov %s2479_s22 }
 0x328   : > { %s3001_s22 = smov %s3003_s6  ;;  %24 = sbr.rel (!%p22_p11) target bundleno = 14 (0xe), region = 119 }
 0x32f   :  { %1547 = vsyncpa [#allocation4], 1 }
 0x330   :  { %1549 = vsyncpa [#allocation4 + $0x1], 1 }
 0x331   :  { %1550 = vsyncpa [#allocation7], 1 }
 0x332   :  { %1552 = vsyncpa [#allocation7 + $0x1], 1 }
 0x333   :  { %1553 = vsyncpa [#allocation10], 1 }
 0x334   :  { %1554 = vsyncpa [#allocation5], 1 }
 0x335   :  { %1556 = vsyncpa [#allocation5 + $0x1], 1 }

</bundles_post_ra>
